<compile_context>
chip_gen: v7x
topology: tpu7x:2x2x1
jax: 0.10.0
libtpu: 0.0.40
codegen_flags: <defaults>
</compile_context>

<pallas_src>
import math

import jax
import jax.numpy as jnp
from jax.experimental import pallas as pl
from jax.experimental.pallas import tpu as pltpu


def _make_concat_kernel(col_sizes):
    """Kernel copying each 2D input into its static column slice of the output."""
    offsets = []
    off = 0
    for c in col_sizes:
        offsets.append(off)
        off += c

    def kernel(*refs):
        in_refs = refs[:-1]
        o_ref = refs[-1]
        # Static slices: offsets/widths are Python ints (compile-time), so the
        # stores lower to plain (unmasked when 128-aligned) vector stores.
        for r, o, c in zip(in_refs, offsets, col_sizes):
            o_ref[:, o:o + c] = r[...]

    return kernel


def concat_pallas(xs, dimension=1):
    """torch.cat(xs, dimension) implemented with a single Pallas copy kernel."""
    xs = list(xs)
    assert len(xs) >= 1
    ndim = xs[0].ndim
    d = dimension % ndim

    lead_shape = xs[0].shape[:d]
    trail_shape = xs[0].shape[d + 1:]
    dtype = xs[0].dtype
    for x in xs:
        assert x.ndim == ndim
        assert x.shape[:d] == lead_shape and x.shape[d + 1:] == trail_shape, (
            "all dims except the concat dim must match")
        assert x.dtype == dtype, "all inputs must share a dtype"

    rows = math.prod(lead_shape) if lead_shape else 1
    trail = math.prod(trail_shape) if trail_shape else 1
    col_sizes = [int(x.shape[d]) * trail for x in xs]
    total_cols = sum(col_sizes)
    out_concat_dim = sum(int(x.shape[d]) for x in xs)

    # Flatten: concat along dim d of NCHW-like tensors == concat along axis 1
    # of (rows, C_i * trailing) slabs (dims after d are contiguous).
    xs2d = [x.reshape(rows, c) for x, c in zip(xs, col_sizes)]

    kernel = _make_concat_kernel(col_sizes)

    out2d = pl.pallas_call(
        kernel,
        out_shape=jax.ShapeDtypeStruct((rows, total_cols), dtype),
        grid=(1,),  # whole batch in one invocation: no per-step grid overhead
        in_specs=[
            pl.BlockSpec((rows, c), lambda i: (0, 0)) for c in col_sizes
        ],
        out_specs=pl.BlockSpec((rows, total_cols), lambda i: (0, 0)),
        compiler_params=pltpu.CompilerParams(
            dimension_semantics=("parallel",)),
    )(*xs2d)

    return out2d.reshape(*lead_shape, out_concat_dim, *trail_shape)


if __name__ == "__main__":
    # Shapes consistent with the module: NCHW feature maps concatenated on
    # dim=1 (channels), e.g. two YOLOP neck features.
    key = jax.random.PRNGKey(0)
    k1, k2 = jax.random.split(key)
    x1 = jax.random.normal(k1, (2, 4, 16, 16), jnp.float32)
    x2 = jax.random.normal(k2, (2, 8, 16, 16), jnp.float32)

    out = concat_pallas([x1, x2], dimension=1)
    out = jax.block_until_ready(out)

    ref = jnp.concatenate([x1, x2], axis=1)
    assert out.shape == (2, 12, 16, 16), out.shape
    assert jnp.array_equal(out, ref), float(jnp.max(jnp.abs(out - ref)))

    print("KERNEL_OK")
</pallas_src>

<mosaic_0001>
module attributes {stable_mosaic.version = 11 : i64} {
  func.func @kernel(%arg0: i32, %arg1: memref<2x1024xf32, #tpu.memory_space<vmem>>, %arg2: memref<2x2048xf32, #tpu.memory_space<vmem>>, %arg3: memref<2x3072xf32, #tpu.memory_space<vmem>>) attributes {dimension_semantics = [#tpu.dimension_semantics<parallel>], iteration_bounds = array<i64: 1>, scalar_prefetch = 0 : i64, scratch_operands = 0 : i64, tpu.core_type = #tpu.core_type<tc>, window_params = [{pipeline_mode = #tpu.pipeline_mode<synchronous>, transform_indices = @transform_0, window_bounds = array<i64: 2, 1024>}, {pipeline_mode = #tpu.pipeline_mode<synchronous>, transform_indices = @transform_1, window_bounds = array<i64: 2, 2048>}, {pipeline_mode = #tpu.pipeline_mode<synchronous>, transform_indices = @transform_2, window_bounds = array<i64: 2, 3072>}]} {
    %c0 = arith.constant 0 : index
    %c0_0 = arith.constant 0 : index
    %0 = vector.load %arg1[%c0, %c0_0] : memref<2x1024xf32, #tpu.memory_space<vmem>>, vector<2x1024xf32>
    %c0_1 = arith.constant 0 : index
    %c0_2 = arith.constant 0 : index
    %1 = vector.load %arg3[%c0_1, %c0_2] : memref<2x3072xf32, #tpu.memory_space<vmem>>, vector<2x1024xf32>
    tpu.vector_store %arg3[%c0_1, %c0_2], %0 {strides = array<i32>} : memref<2x3072xf32, #tpu.memory_space<vmem>>, vector<2x1024xf32>,
    %c0_3 = arith.constant 0 : index
    %c0_4 = arith.constant 0 : index
    %2 = vector.load %arg2[%c0_3, %c0_4] : memref<2x2048xf32, #tpu.memory_space<vmem>>, vector<2x2048xf32>
    %c0_5 = arith.constant 0 : index
    %c1024 = arith.constant 1024 : index
    %3 = vector.load %arg3[%c0_5, %c1024] : memref<2x3072xf32, #tpu.memory_space<vmem>>, vector<2x2048xf32>
    tpu.vector_store %arg3[%c0_5, %c1024], %2 {strides = array<i32>} : memref<2x3072xf32, #tpu.memory_space<vmem>>, vector<2x2048xf32>,
    return
  }
  func.func @transform_0(%arg0: i32) -> (i32, i32) {
    %c0_i32 = arith.constant 0 : i32
    %c0_i32_0 = arith.constant 0 : i32
    %c0_i32_1 = arith.constant 0 : i32
    return %c0_i32, %c0_i32_0 : i32, i32
  }
  func.func @transform_1(%arg0: i32) -> (i32, i32) {
    %c0_i32 = arith.constant 0 : i32
    %c0_i32_0 = arith.constant 0 : i32
    %c0_i32_1 = arith.constant 0 : i32
    return %c0_i32, %c0_i32_0 : i32, i32
  }
  func.func @transform_2(%arg0: i32) -> (i32, i32) {
    %c0_i32 = arith.constant 0 : i32
    %c0_i32_0 = arith.constant 0 : i32
    %c0_i32_1 = arith.constant 0 : i32
    return %c0_i32, %c0_i32_0 : i32, i32
  }
}

</mosaic_0001>

<bundles_post_ra>
// kernel: tpu_custom_call.1
= control target key start
LH: loop header
LB: loop body
LE: loop exit
PB: predicated region body
PF: predicated region fallthrough
CT: control target
= control target key end

     0   :  { %7 = vsyncpa [#allocation3], 0  ;;  %s193_s0 = inlined_call_operand.hbm [shape: f32[2,1024], index: 0, kind: input, shape index: {}]   ;;  %s194_s1 = inlined_call_operand.hbm [shape: f32[2,2048], index: 1, kind: input, shape index: {}]   ;;  %s195_s2 = inlined_call_operand.hbm [shape: f32[2,3072], index: 2, kind: output, shape index: {}]  }
   0x1   :  { %8 = vsyncpa [#allocation6], 0 }
   0x2   :  { %9 = vsyncpa [#allocation4], 0  ;;  %s139_s9 = smov [#allocation2]   ;;  %s140_s11 = smov [#allocation5]  }
   0x3   :  { %s16_s10 = sshll.u32 %s139_s9, 4  ;;  %s26_s12 = sshll.u32 %s140_s11, 4  ;;  %s17_s10 = int_to_ptr.vmem [resolvable:$true] %s16_s10  ;;  %s27_s12 = int_to_ptr.vmem [resolvable:$true] %s26_s12 }
   0x4   :  { %s67_s15 = scalar_lea.hbm %s193_s0, 256 }
   0x5   :  { %p68_p0 = scmp.ne.s32.totalorder %s193_s0, %s67_s15  ;;  %p71_p1 = scmp.lt.u32.totalorder %s67_s15, %s193_s0 }
   0x7   :  { %p73_p2 = pnand %p71_p1, %p68_p0 }
   0x9   :  { %76 = shalt.err (!%p73_p2)
}
   0xa   :  { %s77_s20 = scalar_lea.vmem %s17_s10, 256  ;;  %p82_p4 = scmp.lt.s32.totalorder %s17_s10, %s17_s10 }
   0xb   :  { %p78_p3 = scmp.ne.s32.totalorder %s17_s10, %s77_s20  ;;  %p83_p5 = scmp.lt.s32.totalorder %s77_s20, %s77_s20 }
   0xd   :  { %p84_p6 = por %p83_p5, %p82_p4 }
   0xf   :  { %p85_p7 = pnand %p84_p6, %p78_p3 }
  0x11   :  { %88 = shalt.err (!%p85_p7)
}
  0x12   :  { %19 = dma.hbm_to_vmem [thread:$0]  %s193_s0, 256, %s17_s10, [#allocation3]  }
  0x13   :  { %s89_s25 = scalar_lea.hbm %s194_s1, 512 }
  0x14   :  { %p90_p8 = scmp.ne.s32.totalorder %s194_s1, %s89_s25  ;;  %p93_p9 = scmp.lt.u32.totalorder %s89_s25, %s194_s1 }
  0x16   :  { %p95_p10 = pnand %p93_p9, %p90_p8 }
  0x18   :  { %98 = shalt.err (!%p95_p10)
}
  0x19   :  { %s99_s30 = scalar_lea.vmem %s27_s12, 512  ;;  %p104_p12 = scmp.lt.s32.totalorder %s27_s12, %s27_s12 }
  0x1a   :  { %p100_p11 = scmp.ne.s32.totalorder %s27_s12, %s99_s30  ;;  %p105_p13 = scmp.lt.s32.totalorder %s99_s30, %s99_s30 }
  0x1c   :  { %p106_p0 = por %p105_p13, %p104_p12 }
  0x1e   :  { %p107_p1 = pnand %p106_p0, %p100_p11 }
  0x20   :  { %110 = shalt.err (!%p107_p1)
}
  0x21   :  { %29 = dma.hbm_to_vmem [thread:$0]  %s194_s1, 512, %s27_s12, [#allocation6]  }
  0x22   :  { %133 = dma.done.wait [#allocation3], 256  }
  0x23   :  { %134 = vsyncadd [#allocation3], 4294967040 }
  0x24   :  { %135 = dma.done.wait [#allocation6], 512  }
  0x25   :  { %136 = vsyncadd [#allocation6], 4294966784  ;;  %s141_s4 = smov [#allocation7]   ;;  %v36_v0 = vld [vmem:[#allocation2] sm:$0xff]  ;;  %v37_v1 = vld [vmem:[#allocation2 + $0x8] sm:$0xff] }
  0x26   :  { %s54_s5 = sshll.u32 %s141_s4, 4  ;;  %v40_v2 = vld [vmem:[#allocation5] sm:$0xff]  ;;  %38 = vst [vmem:[#allocation7] sm:$0xff] %v36_v0  ;;  %39 = vst [vmem:[#allocation7 + $0x8] sm:$0xff] %v37_v1  ;;  %v41_v3 = vld [vmem:[#allocation5 + $0x8] sm:$0xff]  ;;  %s55_s5 = int_to_ptr.vmem [resolvable:$true] %s54_s5 }
  0x27   :  { %44 = vst [vmem:[#allocation7 + $0x10] sm:$0xff] %v40_v2  ;;  %v42_v4 = vld [vmem:[#allocation5 + $0x10] sm:$0xff]  ;;  %v43_v5 = vld [vmem:[#allocation5 + $0x18] sm:$0xff]  ;;  %45 = vst [vmem:[#allocation7 + $0x18] sm:$0xff] %v41_v3  ;;  %s111_s1 = scalar_lea.vmem %s55_s5, 768  ;;  %p116_p3 = scmp.lt.s32.totalorder %s55_s5, %s55_s5 }
  0x28   :  { %46 = vst [vmem:[#allocation7 + $0x20] sm:$0xff] %v42_v4  ;;  %47 = vst [vmem:[#allocation7 + $0x28] sm:$0xff] %v43_v5  ;;  %p112_p2 = scmp.ne.s32.totalorder %s55_s5, %s111_s1  ;;  %p117_p4 = scmp.lt.s32.totalorder %s111_s1, %s111_s1 }
  0x2a   :  { %p118_p5 = por %p117_p4, %p116_p3 }
  0x2c   :  { %p119_p6 = pnand %p118_p5, %p112_p2 }
  0x2e   :  { %122 = shalt.err (!%p119_p6)
}
  0x2f   :  { %s123_s8 = scalar_lea.hbm %s195_s2, 768 }
  0x30   :  { %p124_p7 = scmp.ne.s32.totalorder %s195_s2, %s123_s8  ;;  %p127_p8 = scmp.lt.u32.totalorder %s123_s8, %s195_s2 }
  0x32   :  { %p129_p9 = pnand %p127_p8, %p124_p7 }
  0x34   :  { %132 = shalt.err (!%p129_p9)
}
  0x35   :  { %57 = dma.vmem_to_hbm [thread:$0]  %s55_s5, 768, %s195_s2, [#allocation4]  }
  0x36   :  { %137 = dma.done.wait [#allocation4], 768  }
  0x37   :  { %138 = vsyncadd [#allocation4], 4294966528 }
  0x38   :  { %61 = vsyncpa [#allocation3], 1 }
  0x39   :  { %62 = vsyncpa [#allocation6], 1 }
  0x3a   :  { %63 = vsyncpa [#allocation4], 1 }

</bundles_post_ra>
